<compile_context>
chip_gen: v7x
topology: tpu7x:2x2x1
jax: 0.10.0
libtpu: 0.0.40
codegen_flags: <defaults>
</compile_context>

<pallas_src>
import math

import jax
import jax.numpy as jnp
from jax.experimental import pallas as pl
from jax.experimental.pallas import tpu as pltpu


def _round_up(x, m):
    return -(-x // m) * m


def pack_params(params, lane_width=128):
    """Pack all (W, b) pairs into one (rows, lane_width) f32 slab.

    Layer i occupies rows [off_i, off_i + out_i):
        cols [0, in_i)  -> W_i   (PyTorch (out, in) orientation)
        col  in_i       -> b_i
    Row offsets are 8-aligned (sublane tile boundary).
    Returns (slab, meta) with meta = ((row_off, out_dim, in_dim), ...).
    """
    meta = []
    rows = 0
    for (w, _b) in params:
        od, idim = w.shape
        assert idim + 1 <= lane_width, "layer fan-in too large for slab width"
        meta.append((rows, od, idim))
        rows += _round_up(od, 8)
    rows = max(_round_up(rows, 8), 8)

    slab = jnp.zeros((rows, lane_width), jnp.float32)
    for (w, b), (ro, od, idim) in zip(params, meta):
        slab = slab.at[ro:ro + od, 0:idim].set(w.astype(jnp.float32))
        slab = slab.at[ro:ro + od, idim:idim + 1].set(
            jnp.reshape(b, (od, 1)).astype(jnp.float32))
    return slab, tuple(meta)


def make_mlp_kernel(meta):
    """meta: static tuple of (row_offset, out_dim, in_dim) per layer."""
    n_layers = len(meta)

    def kernel(x_ref, slab_ref, o_ref):
        # x_ref: (in_dim0, tm) -- batch on the 128-lane axis.
        h = x_ref[...]
        for idx, (ro, od, idim) in enumerate(meta):
            w = slab_ref[ro:ro + od, 0:idim]           # (od, idim), static slice
            b = slab_ref[ro:ro + od, idim:idim + 1]    # (od, 1), broadcasts over lanes
            h = jnp.dot(w, h, preferred_element_type=jnp.float32) + b
            if idx < n_layers - 1:
                h = jnp.maximum(h, 0.0)                # ReLU on all but last layer
        o_ref[...] = h.astype(o_ref.dtype)             # (out_dim, tm), lane-dense

    return kernel


def mlp_forward(x, params, *, tm=1024, x_feature_major=False):
    """Forward pass of the 5-layer MLP.

    x: (N, in_dim) f32, or (in_dim, N) if x_feature_major=True (avoids the
       wrapper-side transpose / extra HBM pass).
    params: list of (W, b), W: (out, in), b: (out, 1)  (PyTorch orientation).
    Returns (N, out_dim) f32.
    """
    if x_feature_major:
        xt = x
        in_dim, N = x.shape
    else:
        N, in_dim = x.shape
        xt = jnp.transpose(x)                          # (in_dim, N)

    slab, meta = pack_params(params)
    out_dim = meta[-1][1]
    n_blocks = pl.cdiv(N, tm)                          # no pad: partial trailing block

    out_t = pl.pallas_call(
        make_mlp_kernel(meta),
        out_shape=jax.ShapeDtypeStruct((out_dim, N), jnp.float32),
        grid_spec=pltpu.PrefetchScalarGridSpec(
            num_scalar_prefetch=0,
            grid=(n_blocks,),
            in_specs=[
                pl.BlockSpec((in_dim, tm), lambda i: (0, i)),   # batch tile
                pl.BlockSpec(slab.shape, lambda i: (0, 0)),     # resident param slab
            ],
            out_specs=pl.BlockSpec((out_dim, tm), lambda i: (0, i)),
        ),
        compiler_params=pltpu.CompilerParams(
            dimension_semantics=("parallel",)),
    )(xt, slab)

    if out_dim == 1:
        return out_t.reshape(N, 1)                     # pure reshape, no transpose copy
    return jnp.transpose(out_t)


def init_linear(key, fan_in, fan_out):
    """PyTorch default init: U(-1/sqrt(fan_in), 1/sqrt(fan_in)).
    Returns W of shape (fan_out, fan_in), b of shape (fan_out, 1)."""
    kw, kb = jax.random.split(key)
    bound = 1.0 / math.sqrt(fan_in)
    w = jax.random.uniform(kw, (fan_out, fan_in), jnp.float32, -bound, bound)
    b = jax.random.uniform(kb, (fan_out, 1), jnp.float32, -bound, bound)
    return w, b


def reference_forward(x, params):
    h = x
    for idx, (w, b) in enumerate(params):
        h = h @ w.T + b[:, 0]
        if idx < len(params) - 1:
            h = jnp.maximum(h, 0.0)
    return h


if __name__ == "__main__":
    key = jax.random.PRNGKey(0)
    k_x, k1, k2, k3, k4, k5 = jax.random.split(key, 6)

    dims = [(2, 10), (10, 10), (10, 10), (10, 5), (5, 1)]
    params = [init_linear(k, fi, fo)
              for k, (fi, fo) in zip([k1, k2, k3, k4, k5], dims)]

    # Non-multiple batch: exercises the unpadded partial trailing block.
    # tm=1024 -> 2 grid steps, so both v7x TensorCores get a tile.
    N = 2000
    x = jax.random.normal(k_x, (N, 2), dtype=jnp.float32)

    out = mlp_forward(x, params, tm=1024)
    out = jax.block_until_ready(out)

    ref = reference_forward(x, params)
    assert out.shape == (N, 1)
    assert jnp.allclose(out, ref, atol=1e-4, rtol=1e-4), "mismatch vs. JAX reference"

    print("KERNEL_OK")
</pallas_src>

<mosaic_0001>
module attributes {stable_mosaic.version = 11 : i64} {
  func.func @kernel(%arg0: i32, %arg1: memref<2x1024xf32, #tpu.memory_space<vmem>>, %arg2: memref<64x128xf32, #tpu.memory_space<vmem>>, %arg3: memref<1x1024xf32, #tpu.memory_space<vmem>>) attributes {dimension_semantics = [#tpu.dimension_semantics<parallel>], iteration_bounds = array<i64: 2>, scalar_prefetch = 0 : i64, scratch_operands = 0 : i64, tpu.core_type = #tpu.core_type<tc>, window_params = [{transform_indices = @transform_0, window_bounds = array<i64: 2, 1024>}, {pipeline_mode = #tpu.pipeline_mode<synchronous>, transform_indices = @transform_1, window_bounds = array<i64: 64, 128>}, {transform_indices = @transform_2, window_bounds = array<i64: 1, 1024>}]} {
    %c0 = arith.constant 0 : index
    %c0_0 = arith.constant 0 : index
    %0 = vector.load %arg1[%c0, %c0_0] : memref<2x1024xf32, #tpu.memory_space<vmem>>, vector<2x1024xf32>
    %c0_1 = arith.constant 0 : index
    %c0_2 = arith.constant 0 : index
    %1 = vector.load %arg2[%c0_1, %c0_2] : memref<64x128xf32, #tpu.memory_space<vmem>>, vector<10x2xf32>
    %c0_3 = arith.constant 0 : index
    %c2 = arith.constant 2 : index
    %2 = vector.load %arg2[%c0_3, %c2] : memref<64x128xf32, #tpu.memory_space<vmem>>, vector<10x1xf32>
    %cst = arith.constant dense<0.000000e+00> : vector<10x1024xf32>
    %3 = tpu.matmul %1, %0, %cst {dimension_numbers = #tpu.dot_dimension_numbers<[1], [0], [0], [1], [0, 0, 1, 1], [], []>} : vector<10x2xf32>, vector<2x1024xf32>, vector<10x1024xf32> -> vector<10x1024xf32>
    %4 = vector.broadcast %2 : vector<10x1xf32> to vector<10x1024xf32>
    %5 = arith.addf %3, %4 : vector<10x1024xf32>
    %cst_4 = arith.constant 0.000000e+00 : f32
    %6 = vector.broadcast %cst_4 : f32 to vector<10x1024xf32>
    %7 = arith.maximumf %5, %6 : vector<10x1024xf32>
    %c16 = arith.constant 16 : index
    %c0_5 = arith.constant 0 : index
    %8 = vector.load %arg2[%c16, %c0_5] : memref<64x128xf32, #tpu.memory_space<vmem>>, vector<10x10xf32>
    %c16_6 = arith.constant 16 : index
    %c10 = arith.constant 10 : index
    %9 = vector.load %arg2[%c16_6, %c10] : memref<64x128xf32, #tpu.memory_space<vmem>>, vector<10x1xf32>
    %cst_7 = arith.constant dense<0.000000e+00> : vector<10x1024xf32>
    %10 = tpu.matmul %8, %7, %cst_7 {dimension_numbers = #tpu.dot_dimension_numbers<[1], [0], [0], [1], [0, 0, 1, 1], [], []>} : vector<10x10xf32>, vector<10x1024xf32>, vector<10x1024xf32> -> vector<10x1024xf32>
    %11 = vector.broadcast %9 : vector<10x1xf32> to vector<10x1024xf32>
    %12 = arith.addf %10, %11 : vector<10x1024xf32>
    %cst_8 = arith.constant 0.000000e+00 : f32
    %13 = vector.broadcast %cst_8 : f32 to vector<10x1024xf32>
    %14 = arith.maximumf %12, %13 : vector<10x1024xf32>
    %c32 = arith.constant 32 : index
    %c0_9 = arith.constant 0 : index
    %15 = vector.load %arg2[%c32, %c0_9] : memref<64x128xf32, #tpu.memory_space<vmem>>, vector<10x10xf32>
    %c32_10 = arith.constant 32 : index
    %c10_11 = arith.constant 10 : index
    %16 = vector.load %arg2[%c32_10, %c10_11] : memref<64x128xf32, #tpu.memory_space<vmem>>, vector<10x1xf32>
    %cst_12 = arith.constant dense<0.000000e+00> : vector<10x1024xf32>
    %17 = tpu.matmul %15, %14, %cst_12 {dimension_numbers = #tpu.dot_dimension_numbers<[1], [0], [0], [1], [0, 0, 1, 1], [], []>} : vector<10x10xf32>, vector<10x1024xf32>, vector<10x1024xf32> -> vector<10x1024xf32>
    %18 = vector.broadcast %16 : vector<10x1xf32> to vector<10x1024xf32>
    %19 = arith.addf %17, %18 : vector<10x1024xf32>
    %cst_13 = arith.constant 0.000000e+00 : f32
    %20 = vector.broadcast %cst_13 : f32 to vector<10x1024xf32>
    %21 = arith.maximumf %19, %20 : vector<10x1024xf32>
    %c48 = arith.constant 48 : index
    %c0_14 = arith.constant 0 : index
    %22 = vector.load %arg2[%c48, %c0_14] : memref<64x128xf32, #tpu.memory_space<vmem>>, vector<5x10xf32>
    %c48_15 = arith.constant 48 : index
    %c10_16 = arith.constant 10 : index
    %23 = vector.load %arg2[%c48_15, %c10_16] : memref<64x128xf32, #tpu.memory_space<vmem>>, vector<5x1xf32>
    %cst_17 = arith.constant dense<0.000000e+00> : vector<5x1024xf32>
    %24 = tpu.matmul %22, %21, %cst_17 {dimension_numbers = #tpu.dot_dimension_numbers<[1], [0], [0], [1], [0, 0, 1, 1], [], []>} : vector<5x10xf32>, vector<10x1024xf32>, vector<5x1024xf32> -> vector<5x1024xf32>
    %25 = vector.broadcast %23 : vector<5x1xf32> to vector<5x1024xf32>
    %26 = arith.addf %24, %25 : vector<5x1024xf32>
    %cst_18 = arith.constant 0.000000e+00 : f32
    %27 = vector.broadcast %cst_18 : f32 to vector<5x1024xf32>
    %28 = arith.maximumf %26, %27 : vector<5x1024xf32>
    %c56 = arith.constant 56 : index
    %c0_19 = arith.constant 0 : index
    %29 = vector.load %arg2[%c56, %c0_19] : memref<64x128xf32, #tpu.memory_space<vmem>>, vector<1x5xf32>
    %c56_20 = arith.constant 56 : index
    %c5 = arith.constant 5 : index
    %30 = vector.load %arg2[%c56_20, %c5] : memref<64x128xf32, #tpu.memory_space<vmem>>, vector<1x1xf32>
    %cst_21 = arith.constant dense<0.000000e+00> : vector<1x1024xf32>
    %31 = tpu.matmul %29, %28, %cst_21 {dimension_numbers = #tpu.dot_dimension_numbers<[1], [0], [0], [1], [0, 0, 1, 1], [], []>} : vector<1x5xf32>, vector<5x1024xf32>, vector<1x1024xf32> -> vector<1x1024xf32>
    %32 = vector.broadcast %30 : vector<1x1xf32> to vector<1x1024xf32>
    %33 = arith.addf %31, %32 : vector<1x1024xf32>
    %c0_22 = arith.constant 0 : index
    %c0_23 = arith.constant 0 : index
    %34 = vector.load %arg3[%c0_22, %c0_23] : memref<1x1024xf32, #tpu.memory_space<vmem>>, vector<1x1024xf32>
    tpu.vector_store %arg3[%c0_22, %c0_23], %33 {strides = array<i32>} : memref<1x1024xf32, #tpu.memory_space<vmem>>, vector<1x1024xf32>,
    return
  }
  func.func @transform_0(%arg0: i32) -> (i32, i32) {
    %c0_i32 = arith.constant 0 : i32
    %c0_i32_0 = arith.constant 0 : i32
    return %c0_i32, %arg0 : i32, i32
  }
  func.func @transform_1(%arg0: i32) -> (i32, i32) {
    %c0_i32 = arith.constant 0 : i32
    %c0_i32_0 = arith.constant 0 : i32
    %c0_i32_1 = arith.constant 0 : i32
    return %c0_i32, %c0_i32_0 : i32, i32
  }
  func.func @transform_2(%arg0: i32) -> (i32, i32) {
    %c0_i32 = arith.constant 0 : i32
    %c0_i32_0 = arith.constant 0 : i32
    return %c0_i32, %arg0 : i32, i32
  }
}

</mosaic_0001>

<bundles_post_ra>
// kernel: tpu_custom_call.1
= control target key start
LH: loop header
LB: loop body
LE: loop exit
PB: predicated region body
PF: predicated region fallthrough
CT: control target
= control target key end

     0   :  { %7 = vsyncpa [#allocation3], 0  ;;  %s2858_s0 = inlined_call_operand.hbm [shape: f32[2,2000], index: 0, kind: input, shape index: {}]   ;;  %s2859_s1 = inlined_call_operand.hbm [shape: f32[64,128], index: 1, kind: input, shape index: {}]   ;;  %s2860_s2 = inlined_call_operand.hbm [shape: f32[1,2000], index: 2, kind: output, shape index: {}]  }
   0x1   :  { %9 = vsyncpa [#allocation3 + $0x1], 0 }
   0x2   :  { %10 = vsyncpa [#allocation6], 0 }
   0x3   :  { %11 = vsyncpa [#allocation4], 0 }
   0x4   :  { %13 = vsyncpa [#allocation4 + $0x1], 0  ;;  %s2489_s9 = smov 0   ;;  %s2491_s10 = smov 0  }
   0x5   :  { %s2493_s11 = smov 0   ;;  %s2495_s12 = smov 0  }
   0x6 LB: > { %s2510_s13 = sadd.s32 4294967295, %s2460_s12   ;;  %s2098_s14 = sadd.s32 4294967294, %s2460_s12   ;;  %s2460_s12 = sphi %s2495_s12, %s2882_s12   ;;  %s2456_s11 = sphi %s2493_s11, %s2881_s11   ;;  %s2452_s10 = sphi %s2491_s10, %s2880_s10   ;;  %s2448_s9 = sphi %s2489_s9, %s2879_s9  }
   0x7   : > { %p39_p0 = scmp.ne.s32.totalorder %s2452_s10, %s2448_s9  ;;  %p2861_p1 = scmp.eq.s32.totalorder %s2510_s13, 0 }
   0x8   : > { %p90_p3 = scmp.eq.s32.totalorder %s2098_s14, 1  ;;  %p2099_p5 = scmp.ge.s32.totalorder %s2460_s12, 1 }
   0x9   : > { %p2519_p4 = por %p2861_p1, %p39_p0  ;;  %p97_p7 = scmp.lt.s32.totalorder %s2460_s12, 3 }
   0xa   : > { %p2524_p6 = por %p90_p3, %p39_p0  ;;  %s2462_s18 = smov [#allocation5]  }
   0xb   : > { %s2864_s15 = scalar_select %p2519_p4, 1, 0 }
   0xc   : > { %s2865_s16 = scalar_select %p2524_p6, 1, 0 }
   0xd   : > { %p2529_p8 = pnand %p2099_p5, %p97_p7  ;;  %s109_s19 = sshll.u32 %s2462_s18, 4  ;;  %s2533_s19 = int_to_ptr.vmem [resolvable:$true] %s109_s19 }
   0xe   : > { %s2545_s21 = sadd.s32 1, %s2460_s12   ;;  %s26_s22 = sadd.s32 1, %s2456_s11 }
   0xf   : > { %s2866_s17 = scalar_select %p2529_p8, 1, 0 }
  0x10   : > { %p2268_p9 = pneg %p2529_p8  ;;  %s23_s23 = ssub.s32 %s2460_s12, %s2545_s21 }
  0x11   : > { %s2332_s26 = scalar_lea.hbm %s2859_s1, 1024 }
  0x12   : > { %p2540_p11 = pnand %p2268_p9, %p2861_p1  ;;  %p2333_p12 = scmp.ne.s32.totalorder %s2859_s1, %s2332_s26 }
  0x13   : > { %p2339_p5 = scmp.lt.u32.totalorder %s2332_s26, %s2859_s1 }
  0x14   : > { %p2334_p13 = pneg %p2540_p11 }
  0x16   : > { %p2335_p0 = pnand %p2334_p13, %p2333_p12 }
  0x18   : > { %p2336_p3 = pneg %p2335_p0 }
  0x1a   : > { %p2341_p7 = pnand %p2339_p5, %p2336_p3 }
  0x1c   : > { %2344 = shalt.err (!%p2341_p7)
}
  0x1d   : > { %s2345_s3 = scalar_lea.vmem %s2533_s19, 1024  ;;  %p2353_p2 = scmp.lt.s32.totalorder %s2533_s19, %s2533_s19 }
  0x1e   : > { %p2346_p9 = scmp.ne.s32.totalorder %s2533_s19, %s2345_s3  ;;  %p2354_p6 = scmp.lt.s32.totalorder %s2345_s3, %s2345_s3 }
  0x20   : > { %p2348_p10 = pnand %p2346_p9, %p2334_p13  ;;  %p2355_p4 = por %p2354_p6, %p2353_p2 }
  0x22   : > { %p2349_p1 = pneg %p2348_p10 }
  0x24   : > { %p2356_p8 = pnand %p2355_p4, %p2349_p1 }
  0x26   : > { %2359 = shalt.err (!%p2356_p8)
}
  0x27   : > { %s2463_s4 = smov 128   ;;  %s2464_s5 = smov 8  }
  0x28   : > { %2271 = dma.hbm_to_vmem [thread:$0]  (!%p2540_p11), %s2859_s1, 1024, %s2533_s19, [#allocation6], %s2463_s4, %s2463_s4, %s2464_s5  }
  0x29   : > { %p24_p2 = scmp.eq.s32.totalorder %s23_s23, 0  ;;  %p33_p1 = scmp.ne.s32.totalorder %s2456_s11, %s2452_s10 }
  0x2a   : > { %p34_p4 = scmp.eq.s32.totalorder %s2460_s12, 0  ;;  %p2281_p6 = scmp.lt.s32.totalorder %s2460_s12, 2 }
  0x2b   : > { %s2576_s8 = scalar_select %p24_p2, %s2456_s11, %s26_s22  }
  0x2c   : > { %p35_p8 = por %p34_p4, %p33_p1  ;;  %p2868_p10 = scmp.eq.s32.totalorder %s2510_s13, 1 }
  0x2d   : > { %s123_s18 = sand.u32 1, %s2456_s11   ;;  %s2186_s24 = sshll.u32 %s2460_s12, 8 }
  0x2e   : > { %p2580_p12 = por %p2868_p10, %p33_p1  ;;  %s2102_s25 = sshll.u32 %s123_s18, 4 }
  0x2f   : > { %s2589_s27 = scalar_lea.hbm %s2858_s0, %s2186_s24  ;;  %s127_s19 = scalar_lea.vmem [#allocation2], %s2102_s25 }
  0x30   : > { %s135_s22 = sshll.u32 %s127_s19, 4  ;;  %p2591_p11 = pnand %p2281_p6, %p35_p8  ;;  %s2595_s22 = int_to_ptr.vmem [resolvable:$true] %s135_s22 }
  0x31   : > { %s124_s28 = scalar_lea.sflag [#allocation3], %s123_s18  ;;  %s2360_s29 = scalar_lea.hbm %s2589_s27, 256 }
  0x32   : > { %p2361_p13 = scmp.ne.s32.totalorder %s2589_s27, %s2360_s29  ;;  %p2362_p0 = pneg %p2591_p11 }
  0x33   : > { %s2365_s4 = scalar_lea.hbm %s2858_s0, 512  ;;  %p2366_p7 = scmp.lt.u32.totalorder %s2589_s27, %s2858_s0 }
  0x34   : > { %p2363_p3 = pnand %p2362_p0, %p2361_p13  ;;  %p2367_p9 = scmp.lt.u32.totalorder %s2365_s4, %s2360_s29 }
  0x35   : > { %p2369_p1 = scmp.lt.u32.totalorder %s2360_s29, %s2589_s27 }
  0x36   : > { %p2364_p5 = pneg %p2363_p3  ;;  %p2368_p2 = por %p2367_p9, %p2366_p7 }
  0x38   : > { %p2370_p4 = por %p2369_p1, %p2368_p2 }
  0x3a   : > { %p2371_p6 = pnand %p2370_p4, %p2364_p5 }
  0x3c   : > { %2374 = shalt.err (!%p2371_p6)
}
  0x3d   : > { %s2375_s7 = scalar_lea.vmem %s2595_s22, 256  ;;  %s2465_s18 = smov [#allocation2]  }
  0x3e   : > { %p2376_p8 = scmp.ne.s32.totalorder %s2595_s22, %s2375_s7  ;;  %s2380_s24 = sshll.u32 %s2465_s18, 4  ;;  %s2381_s24 = int_to_ptr.vmem [resolvable:$false] %s2380_s24 }
  0x3f   : > { %s2382_s25 = scalar_lea.vmem %s2381_s24, 512  ;;  %p2383_p3 = scmp.lt.s32.totalorder %s2595_s22, %s2381_s24 }
  0x40   : > { %p2378_p10 = pnand %p2376_p8, %p2362_p0  ;;  %p2384_p7 = scmp.lt.s32.totalorder %s2382_s25, %s2375_s7 }
  0x42   : > { %p2379_p13 = pneg %p2378_p10  ;;  %p2385_p9 = por %p2384_p7, %p2383_p3 }
  0x44   : > { %p2386_p2 = pnand %p2385_p9, %p2379_p13 }
  0x46   : > { %2389 = shalt.err (!%p2386_p2)
}
  0x47   : > { %2275 = dma.hbm_to_vmem [thread:$0]  (!%p2591_p11), %s2589_s27, 256, %s2595_s22, %s124_s28  }
  0x48   : > { %p2871_p5 = scmp.ne.s32.totalorder %s2866_s17, 0 }
  0x49   : > { %s2625_s20 = sand.u32 (!%p2871_p5), 1, %s2452_s10   ;;  %p2872_p0 = scmp.ne.s32.totalorder (!%p2871_p5), %s2864_s15, 0 }
  0x4a   : > { %144 = sbr.rel (%p2871_p5) target bundleno = 1247 (0x4df), region = 28  ;;  %s2106_s26 = sshll.u32 (!%p2871_p5), %s2625_s20, 4 }
  0x4b   : > { %s147_s19 = scalar_lea.sflag (!%p2871_p5), [#allocation3], %s2625_s20  ;;  %s150_s29 = scalar_lea.vmem (!%p2871_p5), [#allocation2], %s2106_s26 }
  0x51   : > { %2435 = dma.done.wait (%p2872_p0), %s147_s19, 256  }
  0x52   : > { %2437 = vsyncadd (%p2872_p0), %s147_s19, 4294967040  ;;  %p2873_p1 = scmp.eq.s32.totalorder %s2510_s13, 0 }
  0x54   : > { %2439 = dma.done.wait (%p2873_p1), [#allocation6], 1024   ;;  %p2874_p11 = pmov %p2873_p1 }
  0x55   : > { %v197_v0 = vlaneseq  ;;  %v2466_v1 = vmov 1983009808   ;;  %v2467_v4 = vmov 0.0   ;;  %v2468_v6 = vmov 2   ;;  %v177_v8 = vld [vmem:[%s150_s29] sm:$0xff]  ;;  %v178_v12 = vld [vmem:[%s150_s29 + $0x8] sm:$0xff] }
  0x56   : > { %2441 = vsyncadd (%p2874_p11), [#allocation6], 4294966272  ;;  %v195_v2 = vunpack.c.l.s4 %v2466_v1  ;;  %313 = vmatprep.mubr.f32.mxu0 %v2467_v4  ;;  %390 = vmatprep.mubr.f32.mxu1 %v2467_v4  ;;  %v179_v9 = vld [vmem:[#allocation5] sm:$0xff]  ;;  %v193_v11 = vcombine.high %v177_v8, %v177_v8  ;;  %vm232_vm0 = vcmask 1041408   ;;  %v210_v14 = vcombine.high %v178_v12, %v178_v12  ;;  %v180_v17 = vld [vmem:[#allocation5 + $0x8] sm:$0x3] }
  0x57   : > { %v2637_v3 = vshrl.u32 %v197_v0, 7  ;;  %2326 = vset.pattern.permute.xlu0 %v2468_v6  ;;  %vm227_vm1 = vcmask 15360   ;;  %v2666_v22 = vld [vmem:[#allocation5 + $0x10] sm:$0xff]  ;;  %v2469_v23 = vmov 10   ;;  %v2669_v24 = vld [vmem:[#allocation5 + $0x18] sm:$0x3] }
  0x58   : > { %v196_v5 = vunpack.c.0.s8 %v195_v2  ;;  %183 = vperm.xlu0 %2326, %v179_v9   ;;  %2327 = vset.pattern.permute.xlu1 %v2469_v23  ;;  %v2672_v25 = vld [vmem:[#allocation5 + $0x28] sm:$0x3]  ;;  %v2675_v26 = vld [vmem:[#allocation5 + $0x30] sm:$0x1f]  ;;  %vm2470_vm2 = vmmov 1   ;;  %vm585_vm4 = vcmask 80896  }
  0x59   : > { %577 = vperm.xlu1 %2327, %v2666_v22   ;;  %vm2679_vm3 = vmpackc.low %vm232_vm0, %vm2470_vm2  ;;  %vm1635_vm5 = vcmask 1044480   ;;  %vm1632_vm6 = vcmask 39936   ;;  %s2108_s15 = sshll.u32 %s2625_s20, 3  ;;  %s2187_s17 = sshll.u32 %s2510_s13, 7 }
  0x5a   : > { %v199_v7 = vsub.s32 %v196_v5, %v2637_v3  ;;  %s174_s27 = scalar_lea.vmem [#allocation7], %s2108_s15  ;;  %s2814_s30 = scalar_lea.hbm %s2860_s2, %s2187_s17 }
  0x5b   : > { %s2018_s22 = sshll.u32 %s174_s27, 4  ;;  %s2004_s3 = scalar_lea.sflag [#allocation4], %s2625_s20  ;;  %s2816_s22 = int_to_ptr.vmem [resolvable:$true] %s2018_s22 }
  0x5c   : > { %v200_v10 = vrot.slane %v177_v8, %v199_v7  ;;  %v217_v13 = vrot.slane %v178_v12, %v199_v7  ;;  %v207_v16 = vrot.slane %v193_v11, %v199_v7  ;;  %v224_v18 = vrot.slane %v210_v14, %v199_v7  ;;  %188 = vperm.xlu0 %2326, %v180_v17   ;;  %s2390_s4 = scalar_lea.vmem %s2816_s22, 128  ;;  %s2473_s13 = smov [#allocation7]  }
  0x5d   : > { %582 = vperm.xlu1 %2327, %v2669_v24   ;;  %p2391_p4 = scmp.ne.s32.totalorder %s2816_s22, %s2390_s4  ;;  %s2394_s5 = sshll.u32 %s2473_s13, 4  ;;  %s2395_s5 = int_to_ptr.vmem [resolvable:$false] %s2394_s5 }
  0x5e   : > { %v208_v15 = vcombine.high %v200_v10, %v200_v10  ;;  %v209_v19 = vcombine.high %v207_v16, %v207_v16  ;;  %v225_v20 = vcombine.high %v217_v13, %v217_v13  ;;  %v226_v21 = vcombine.high %v224_v18, %v224_v18  ;;  %s2396_s6 = scalar_lea.vmem %s2395_s5, 256  ;;  %p2397_p10 = scmp.lt.s32.totalorder %s2816_s22, %s2395_s5 }
  0x5f   : > { %p2392_p6 = pnand %p2391_p4, %p2580_p12  ;;  %p2398_p13 = scmp.lt.s32.totalorder %s2396_s6, %s2390_s4 }
  0x60   : > { %2109 = vmatprep.subr.msk.mxu0 %vm232_vm0, %v208_v15  ;;  %2113 = vmatprep.subr.msk.mxu1 %vm232_vm0, %v209_v19 }
  0x61   : > { %2110 = vmatpush1.msk.msra.mxu0 %vm232_vm0, %v200_v10  ;;  %2114 = vmatpush1.msk.msra.mxu1 %vm232_vm0, %v207_v16  ;;  %p2393_p8 = pneg %p2392_p6  ;;  %p2399_p3 = por %p2398_p13, %p2397_p10 }
  0x62   : > { %2111 = vmatmul.mubr.msk.f32.vlgmr.msra.gmra.mrb[0].mxu0 %vm227_vm1, %v179_v9  ;;  %2115 = vmatmul.mubr.msk.f32.vlgmr.msra.gmra.mrb[0].mxu1 %vm227_vm1, %v179_v9 }
  0x63   : > { %319 = vmatprep.mubr.f32.mxu0 %v2467_v4  ;;  %2117 = vmatprep.subr.msk.mxu0 %vm232_vm0, %v225_v20  ;;  %p2400_p7 = pnand %p2399_p3, %p2393_p8 }
  0x64   : > { %396 = vmatprep.mubr.f32.mxu1 %v2467_v4  ;;  %2121 = vmatprep.subr.msk.mxu1 %vm232_vm0, %v226_v21 }
  0x65   : > { %2122 = vmatpush1.msk.msra.mxu1 %vm232_vm0, %v224_v18  ;;  %2118 = vmatpush1.msk.msra.mxu0 %vm232_vm0, %v217_v13 }
  0x66   : > { %2112 = vmatmul.mubr.msk.f32.gmra.mrb[2].mxu0 %vm227_vm1, %v180_v17  ;;  %2116 = vmatmul.mubr.msk.f32.gmra.mrb[2].mxu1 %vm227_vm1, %v180_v17 }
  0x67   : > { %467 = vmatprep.mubr.f32.mxu0 %v2467_v4  ;;  %544 = vmatprep.mubr.f32.mxu1 %v2467_v4 }
  0x68   : > { %2328 = vset.pattern.permute.xlu0 %v2469_v23  ;;  %947 = vperm.xlu1 %2327, %v2672_v25  }
  0x6a   : > { %2119 = vmatmul.mubr.msk.f32.vlgmr.msra.gmra.mrb[4].mxu0 %vm227_vm1, %v179_v9  ;;  %2123 = vmatmul.mubr.msk.f32.vlgmr.msra.gmra.mrb[4].mxu1 %vm227_vm1, %v179_v9 }
  0x6b   : > { %473 = vmatprep.mubr.f32.mxu0 %v2467_v4  ;;  %550 = vmatprep.mubr.f32.mxu1 %v2467_v4 }
  0x6c   : > { %1305 = vperm.xlu1 %2327, %v2675_v26  }
  0x6e   : > { %2120 = vmatmul.mubr.msk.f32.gmra.mrb[6].mxu0 %vm227_vm1, %v180_v17  ;;  %2124 = vmatmul.mubr.msk.f32.gmra.mrb[6].mxu1 %vm227_vm1, %v180_v17 }
  0x6f   : > { %678 = vmatprep.mubr.f32.mxu0 %v2467_v4  ;;  %755 = vmatprep.mubr.f32.mxu1 %v2467_v4 }
  0xd7   : > { %v184_v27 = vpop.permute.xlu0 %183 }
  0xdb   : > { %v189_v31 = vpop.permute.xlu0 %188 }
 0x135   : > { %v315_v28 = vpop.f32.mrb[0].mxu0  ;;  %v392_v30 = vpop.f32.mrb[0].mxu1 }
 0x136   : > { %v317_v29 = vpop.f32.mrb[1].mxu0  ;;  %v316_v32 = vadd.f32 %v315_v28, %v184_v27  ;;  %v394_v33 = vpop.f32.mrb[1].mxu1  ;;  %v393_v36 = vadd.f32 %v392_v30, %v184_v27  ;;  %v2723_v28 = vld [vmem:[#allocation5 + $0x20] sm:$0xff] }
 0x137   : > { %v318_v34 = vadd.f32 %v317_v29, %v184_v27  ;;  %v395_v39 = vadd.f32 %v394_v33, %v184_v27  ;;  %942 = vperm.xlu0 %2328, %v2723_v28   ;;  %v578_v29 = vpop.permute.xlu1 %577 }
 0x138   : > { %v557_v42 = vmax.f32 %v316_v32, 0.0  ;;  %v559_v51 = vmax.f32 %v393_v36, 0.0 }
 0x139   : > { %v321_v35 = vpop.f32.mrb[2].mxu0  ;;  %v398_v41 = vpop.f32.mrb[2].mxu1  ;;  %v558_v46 = vmax.f32 %v318_v34, 0.0  ;;  %v560_v55 = vmax.f32 %v395_v39, 0.0 }
 0x13a   : > { %v322_v37 = vadd.f32 %v321_v35, %v189_v31  ;;  %v323_v38 = vpop.f32.mrb[3].mxu0  ;;  %v399_v44 = vadd.f32 %v398_v41, %v189_v31  ;;  %v400_v45 = vpop.f32.mrb[3].mxu1 }
 0x13b   : > { %v324_v40 = vadd.f32 %v323_v38, %v189_v31  ;;  %v401_v48 = vadd.f32 %v400_v45, %v189_v31  ;;  %v583_v34 = vpop.permute.xlu1 %582 }
 0x13c   : > { %v565_v43 = vmax.f32 %v322_v37, 0.0  ;;  %v567_v53 = vmax.f32 %v399_v44, 0.0 }
 0x13d   : > { %v566_v47 = vmax.f32 %v324_v40, 0.0  ;;  %v469_v49 = vpop.f32.mrb[4].mxu0  ;;  %v568_v57 = vmax.f32 %v401_v48, 0.0  ;;  %v546_v58 = vpop.f32.mrb[4].mxu1 }
 0x13e   : > { %v2191_v52 = vpack.c.bf16 %v565_v43, %v557_v42  ;;  %v471_v54 = vpop.f32.mrb[5].mxu0  ;;  %v2197_v59 = vpack.c.bf16 %v567_v53, %v559_v51  ;;  %v470_v60 = vadd.f32 %v469_v49, %v184_v27  ;;  %v548_v61 = vpop.f32.mrb[5].mxu1  ;;  %v547_v1 = vadd.f32 %v546_v58, %v184_v27 }
 0x13f   : > { %v2188_v56 = vpack.c.bf16 %v566_v47, %v558_v46  ;;  %v2194_v62 = vpack.c.bf16 %v568_v57, %v560_v55  ;;  %v472_v63 = vadd.f32 %v471_v54, %v184_v27  ;;  %v549_v6 = vadd.f32 %v548_v61, %v184_v27 }
 0x140   : > { %v561_v9 = vmax.f32 %v470_v60, 0.0  ;;  %v563_v16 = vmax.f32 %v547_v1, 0.0 }
 0x141   : > { %v475_v0 = vpop.f32.mrb[6].mxu0  ;;  %2190 = vmatprep.subr.msk.bf16.mxu0 %vm2679_vm3, %v2188_v56  ;;  %v552_v8 = vpop.f32.mrb[6].mxu1  ;;  %2196 = vmatprep.subr.msk.bf16.mxu1 %vm2679_vm3, %v2194_v62  ;;  %v562_v13 = vmax.f32 %v472_v63, 0.0  ;;  %v564_v19 = vmax.f32 %v549_v6, 0.0 }
 0x142   : > { %v476_v2 = vadd.f32 %v475_v0, %v189_v31  ;;  %v477_v5 = vpop.f32.mrb[7].mxu0  ;;  %2193 = vmatpush1.bf16.msk.msra.mxu0 %vm2679_vm3, %v2191_v52  ;;  %v553_v11 = vadd.f32 %v552_v8, %v189_v31  ;;  %v554_v12 = vpop.f32.mrb[7].mxu1  ;;  %2199 = vmatpush1.bf16.msk.msra.mxu1 %vm2679_vm3, %v2197_v59 }
 0x143   : > { %v478_v7 = vadd.f32 %v477_v5, %v189_v31  ;;  %v555_v15 = vadd.f32 %v554_v12, %v189_v31 }
 0x144   : > { %v569_v10 = vmax.f32 %v476_v2, 0.0  ;;  %v571_v18 = vmax.f32 %v553_v11, 0.0 }
 0x145   : > { %v570_v14 = vmax.f32 %v478_v7, 0.0  ;;  %2127 = vmatmul.mubr.msk.f32.vlgmr.msra.gmra.mrb[8].mxu0 %vm585_vm4, %v2666_v22  ;;  %v572_v21 = vmax.f32 %v555_v15, 0.0  ;;  %2131 = vmatmul.mubr.msk.f32.vlgmr.msra.gmra.mrb[8].mxu1 %vm585_vm4, %v2666_v22 }
 0x146   : > { %v2203_v17 = vpack.c.bf16 %v569_v10, %v561_v9  ;;  %684 = vmatprep.mubr.f32.mxu0 %v2467_v4  ;;  %v2209_v23 = vpack.c.bf16 %v571_v18, %v563_v16  ;;  %761 = vmatprep.mubr.f32.mxu1 %v2467_v4 }
 0x147   : > { %v2200_v20 = vpack.c.bf16 %v570_v14, %v562_v13  ;;  %v2206_v27 = vpack.c.bf16 %v572_v21, %v564_v19 }
 0x149   : > { %2128 = vmatmul.mubr.msk.f32.gmra.mrb[10].mxu0 %vm585_vm4, %v2669_v24  ;;  %2202 = vmatprep.subr.msk.bf16.mxu0 %vm2679_vm3, %v2200_v20 }
 0x14a   : > { %2205 = vmatpush1.bf16.msk.msra.mxu0 %vm2679_vm3, %v2203_v17  ;;  %832 = vmatprep.mubr.f32.mxu0 %v2467_v4 }
 0x14b   : > { %2132 = vmatmul.mubr.msk.f32.gmra.mrb[10].mxu1 %vm585_vm4, %v2669_v24  ;;  %2208 = vmatprep.subr.msk.bf16.mxu1 %vm2679_vm3, %v2206_v27 }
 0x14c   : > { %2211 = vmatpush1.bf16.msk.msra.mxu1 %vm2679_vm3, %v2209_v23  ;;  %909 = vmatprep.mubr.f32.mxu1 %v2467_v4 }
 0x14d   : > { %2135 = vmatmul.mubr.msk.f32.vlgmr.msra.gmra.mrb[12].mxu0 %vm585_vm4, %v2666_v22 }
 0x14e   : > { %838 = vmatprep.mubr.f32.mxu0 %v2467_v4 }
 0x14f   : > { %2139 = vmatmul.mubr.msk.f32.vlgmr.msra.gmra.mrb[12].mxu1 %vm585_vm4, %v2666_v22 }
 0x150   : > { %915 = vmatprep.mubr.f32.mxu1 %v2467_v4 }
 0x151   : > { %2136 = vmatmul.mubr.msk.f32.gmra.mrb[14].mxu0 %vm585_vm4, %v2669_v24 }
 0x152   : > { %1042 = vmatprep.mubr.f32.mxu0 %v2467_v4 }
 0x153   : > { %2140 = vmatmul.mubr.msk.f32.gmra.mrb[14].mxu1 %vm585_vm4, %v2669_v24 }
 0x154   : > { %1119 = vmatprep.mubr.f32.mxu1 %v2467_v4 }
 0x218   : > { %v680_v30 = vpop.f32.mrb[8].mxu0  ;;  %v757_v22 = vpop.f32.mrb[8].mxu1 }
 0x219   : > { %v682_v31 = vpop.f32.mrb[9].mxu0  ;;  %v681_v32 = vadd.f32 %v680_v30, %v578_v29  ;;  %v759_v33 = vpop.f32.mrb[9].mxu1  ;;  %v758_v37 = vadd.f32 %v757_v22, %v578_v29 }
 0x21a   : > { %v683_v35 = vadd.f32 %v682_v31, %v578_v29  ;;  %v760_v40 = vadd.f32 %v759_v33, %v578_v29  ;;  %v943_v30 = vpop.permute.xlu0 %942 }
 0x21b   : > { %v922_v42 = vmax.f32 %v681_v32, 0.0  ;;  %v924_v51 = vmax.f32 %v758_v37, 0.0 }
 0x21c   : > { %v686_v36 = vpop.f32.mrb[10].mxu0  ;;  %v923_v46 = vmax.f32 %v683_v35, 0.0  ;;  %v925_v55 = vmax.f32 %v760_v40, 0.0 }
 0x21d   : > { %v687_v38 = vadd.f32 %v686_v36, %v583_v34  ;;  %v688_v39 = vpop.f32.mrb[11].mxu0 }
 0x21e   : > { %v689_v24 = vadd.f32 %v688_v39, %v583_v34  ;;  %v763_v41 = vpop.f32.mrb[10].mxu1 }
 0x21f   : > { %v930_v43 = vmax.f32 %v687_v38, 0.0  ;;  %v764_v44 = vadd.f32 %v763_v41, %v583_v34  ;;  %v765_v45 = vpop.f32.mrb[11].mxu1 }
 0x220   : > { %v931_v47 = vmax.f32 %v689_v24, 0.0  ;;  %v766_v48 = vadd.f32 %v765_v45, %v583_v34  ;;  %v834_v49 = vpop.f32.mrb[12].mxu0 }
 0x221   : > { %v2215_v52 = vpack.c.bf16 %v930_v43, %v922_v42  ;;  %v932_v53 = vmax.f32 %v764_v44, 0.0  ;;  %v836_v54 = vpop.f32.mrb[13].mxu0  ;;  %v835_v60 = vadd.f32 %v834_v49, %v578_v29 }
 0x222   : > { %v2212_v56 = vpack.c.bf16 %v931_v47, %v923_v46  ;;  %v933_v57 = vmax.f32 %v766_v48, 0.0  ;;  %v911_v58 = vpop.f32.mrb[12].mxu1  ;;  %v837_v63 = vadd.f32 %v836_v54, %v578_v29 }
 0x223   : > { %v2221_v59 = vpack.c.bf16 %v932_v53, %v924_v51  ;;  %v913_v61 = vpop.f32.mrb[13].mxu1  ;;  %v912_v1 = vadd.f32 %v911_v58, %v578_v29  ;;  %v926_v9 = vmax.f32 %v835_v60, 0.0 }
 0x224   : > { %v2218_v62 = vpack.c.bf16 %v933_v57, %v925_v55  ;;  %v840_v0 = vpop.f32.mrb[14].mxu0  ;;  %2214 = vmatprep.subr.msk.bf16.mxu0 %vm2679_vm3, %v2212_v56  ;;  %v914_v6 = vadd.f32 %v913_v61, %v578_v29  ;;  %v927_v13 = vmax.f32 %v837_v63, 0.0 }
 0x225   : > { %v841_v2 = vadd.f32 %v840_v0, %v583_v34  ;;  %v842_v5 = vpop.f32.mrb[15].mxu0  ;;  %2217 = vmatpush1.bf16.msk.msra.mxu0 %vm2679_vm3, %v2215_v52  ;;  %v928_v16 = vmax.f32 %v912_v1, 0.0 }
 0x226   : > { %v843_v7 = vadd.f32 %v842_v5, %v583_v34  ;;  %v917_v8 = vpop.f32.mrb[14].mxu1  ;;  %2220 = vmatprep.subr.msk.bf16.mxu1 %vm2679_vm3, %v2218_v62  ;;  %v929_v19 = vmax.f32 %v914_v6, 0.0 }
 0x227   : > { %v934_v10 = vmax.f32 %v841_v2, 0.0  ;;  %v918_v11 = vadd.f32 %v917_v8, %v583_v34  ;;  %v919_v12 = vpop.f32.mrb[15].mxu1  ;;  %2223 = vmatpush1.bf16.msk.msra.mxu1 %vm2679_vm3, %v2221_v59 }
 0x228   : > { %v935_v14 = vmax.f32 %v843_v7, 0.0  ;;  %v920_v15 = vadd.f32 %v919_v12, %v583_v34  ;;  %2143 = vmatmul.mubr.msk.f32.vlgmr.msra.gmra.mrb[16].mxu0 %vm585_vm4, %v2723_v28  ;;  %v948_v34 = vpop.permute.xlu1 %947 }
 0x229   : > { %v2227_v17 = vpack.c.bf16 %v934_v10, %v926_v9  ;;  %v936_v18 = vmax.f32 %v918_v11, 0.0  ;;  %1048 = vmatprep.mubr.f32.mxu0 %v2467_v4 }
 0x22a   : > { %v2224_v20 = vpack.c.bf16 %v935_v14, %v927_v13  ;;  %v937_v21 = vmax.f32 %v920_v15, 0.0  ;;  %2147 = vmatmul.mubr.msk.f32.vlgmr.msra.gmra.mrb[16].mxu1 %vm585_vm4, %v2723_v28 }
 0x22b   : > { %v2233_v23 = vpack.c.bf16 %v936_v18, %v928_v16  ;;  %1125 = vmatprep.mubr.f32.mxu1 %v2467_v4 }
 0x22c   : > { %v2230_v27 = vpack.c.bf16 %v937_v21, %v929_v19  ;;  %2144 = vmatmul.mubr.msk.f32.gmra.mrb[18].mxu0 %vm585_vm4, %v2672_v25  ;;  %2226 = vmatprep.subr.msk.bf16.mxu0 %vm2679_vm3, %v2224_v20 }
 0x22d   : > { %2229 = vmatpush1.bf16.msk.msra.mxu0 %vm2679_vm3, %v2227_v17  ;;  %1196 = vmatprep.mubr.f32.mxu0 %v2467_v4 }
 0x22e   : > { %2148 = vmatmul.mubr.msk.f32.gmra.mrb[18].mxu1 %vm585_vm4, %v2672_v25  ;;  %2232 = vmatprep.subr.msk.bf16.mxu1 %vm2679_vm3, %v2230_v27  ;;  %v2471_v27 = vmov 5  }
 0x22f   : > { %2235 = vmatpush1.bf16.msk.msra.mxu1 %vm2679_vm3, %v2233_v23  ;;  %1273 = vmatprep.mubr.f32.mxu1 %v2467_v4  ;;  %v1626_v23 = vld [vmem:[#allocation5 + $0x38] sm:$0x1] }
 0x230   : > { %2151 = vmatmul.mubr.msk.f32.vlgmr.msra.gmra.mrb[20].mxu0 %vm585_vm4, %v2723_v28  ;;  %2329 = vset.pattern.permute.xlu0 %v2471_v27 }
 0x231   : > { %1202 = vmatprep.mubr.f32.mxu0 %v2467_v4  ;;  %1629 = vperm.xlu0 %2329, %v1626_v23  }
 0x232   : > { %2155 = vmatmul.mubr.msk.f32.vlgmr.msra.gmra.mrb[20].mxu1 %vm585_vm4, %v2723_v28 }
 0x233   : > { %1279 = vmatprep.mubr.f32.mxu1 %v2467_v4 }
 0x234   : > { %2152 = vmatmul.mubr.msk.f32.gmra.mrb[22].mxu0 %vm585_vm4, %v2672_v25 }
 0x235   : > { %1398 = vmatprep.mubr.f32.mxu0 %v2467_v4 }
 0x236   : > { %2156 = vmatmul.mubr.msk.f32.gmra.mrb[22].mxu1 %vm585_vm4, %v2672_v25 }
 0x237   : > { %1469 = vmatprep.mubr.f32.mxu1 %v2467_v4 }
 0x2fb   : > { %v1044_v29 = vpop.f32.mrb[16].mxu0 }
 0x2fc   : > { %v1046_v31 = vpop.f32.mrb[17].mxu0  ;;  %v1045_v32 = vadd.f32 %v1044_v29, %v943_v30  ;;  %v1306_v29 = vpop.permute.xlu1 %1305 }
 0x2fd   : > { %v1121_v22 = vpop.f32.mrb[16].mxu1  ;;  %v1047_v35 = vadd.f32 %v1046_v31, %v943_v30 }
 0x2fe   : > { %v1123_v33 = vpop.f32.mrb[17].mxu1  ;;  %v1122_v38 = vadd.f32 %v1121_v22, %v943_v30  ;;  %v1286_v41 = vmax.f32 %v1045_v32, 0.0 }
 0x2ff   : > { %v1050_v28 = vpop.f32.mrb[18].mxu0  ;;  %v1124_v39 = vadd.f32 %v1123_v33, %v943_v30  ;;  %v1287_v44 = vmax.f32 %v1047_v35, 0.0 }
 0x300   : > { %v1051_v36 = vadd.f32 %v1050_v28, %v948_v34  ;;  %v1052_v37 = vpop.f32.mrb[19].mxu0  ;;  %v1288_v49 = vmax.f32 %v1122_v38, 0.0 }
 0x301   : > { %v1053_v40 = vadd.f32 %v1052_v37, %v948_v34  ;;  %v1127_v24 = vpop.f32.mrb[18].mxu1  ;;  %v1289_v53 = vmax.f32 %v1124_v39, 0.0 }
 0x302   : > { %v1294_v42 = vmax.f32 %v1051_v36, 0.0  ;;  %v1128_v25 = vadd.f32 %v1127_v24, %v948_v34  ;;  %v1129_v43 = vpop.f32.mrb[19].mxu1 }
 0x303   : > { %v1295_v45 = vmax.f32 %v1053_v40, 0.0  ;;  %v1130_v46 = vadd.f32 %v1129_v43, %v948_v34  ;;  %v1198_v47 = vpop.f32.mrb[20].mxu0 }
 0x304   : > { %v2239_v48 = vpack.c.bf16 %v1294_v42, %v1286_v41  ;;  %v1296_v51 = vmax.f32 %v1128_v25, 0.0  ;;  %v1200_v52 = vpop.f32.mrb[21].mxu0  ;;  %v1199_v58 = vadd.f32 %v1198_v47, %v943_v30 }
 0x305   : > { %v2236_v54 = vpack.c.bf16 %v1295_v45, %v1287_v44  ;;  %v1297_v55 = vmax.f32 %v1130_v46, 0.0  ;;  %v1275_v56 = vpop.f32.mrb[20].mxu1  ;;  %v1201_v61 = vadd.f32 %v1200_v52, %v943_v30 }
 0x306   : > { %v2245_v57 = vpack.c.bf16 %v1296_v51, %v1288_v49  ;;  %v1277_v59 = vpop.f32.mrb[21].mxu1  ;;  %v1276_v63 = vadd.f32 %v1275_v56, %v943_v30  ;;  %v1290_v7 = vmax.f32 %v1199_v58, 0.0  ;;  %v1630_v51 = vpop.permute.xlu0 %1629 }
 0x307   : > { %v2242_v60 = vpack.c.bf16 %v1297_v55, %v1289_v53  ;;  %v1204_v62 = vpop.f32.mrb[22].mxu0  ;;  %2238 = vmatprep.subr.msk.bf16.mxu0 %vm2679_vm3, %v2236_v54  ;;  %v1278_v2 = vadd.f32 %v1277_v59, %v943_v30  ;;  %v1291_v11 = vmax.f32 %v1201_v61, 0.0 }
 0x308   : > { %v1205_v0 = vadd.f32 %v1204_v62, %v948_v34  ;;  %v1206_v1 = vpop.f32.mrb[23].mxu0  ;;  %2241 = vmatpush1.bf16.msk.msra.mxu0 %vm2679_vm3, %v2239_v48  ;;  %v1292_v14 = vmax.f32 %v1276_v63, 0.0  ;;  %v2472_v48 = vmov 1966171168  }
 0x309   : > { %v1207_v5 = vadd.f32 %v1206_v1, %v948_v34  ;;  %v1281_v6 = vpop.f32.mrb[22].mxu1  ;;  %2244 = vmatprep.subr.msk.bf16.mxu1 %vm2679_vm3, %v2242_v60  ;;  %v1293_v17 = vmax.f32 %v1278_v2, 0.0  ;;  %v1957_v49 = vunpack.c.l.s4 %v2472_v48 }
 0x30a   : > { %v1298_v8 = vmax.f32 %v1205_v0, 0.0  ;;  %v1282_v9 = vadd.f32 %v1281_v6, %v948_v34  ;;  %v1283_v10 = vpop.f32.mrb[23].mxu1  ;;  %2247 = vmatpush1.bf16.msk.msra.mxu1 %vm2679_vm3, %v2245_v57 }
 0x30b   : > { %v1299_v12 = vmax.f32 %v1207_v5, 0.0  ;;  %v1284_v13 = vadd.f32 %v1283_v10, %v948_v34  ;;  %2159 = vmatmul.mubr.msk.f32.vlgmr.msra.gmra.mrb[24].mxu0 %vm585_vm4, %v2675_v26 }
 0x30c   : > { %v2251_v15 = vpack.c.bf16 %v1298_v8, %v1290_v7  ;;  %v1300_v16 = vmax.f32 %v1282_v9, 0.0  ;;  %1540 = vmatprep.mubr.f32.mxu0 %v2467_v4 }
 0x30d   : > { %v2248_v18 = vpack.c.bf16 %v1299_v12, %v1291_v11  ;;  %v1301_v19 = vmax.f32 %v1284_v13, 0.0  ;;  %2162 = vmatmul.mubr.msk.f32.vlgmr.msra.gmra.mrb[24].mxu1 %vm585_vm4, %v2675_v26 }
 0x30e   : > { %v2257_v20 = vpack.c.bf16 %v1300_v16, %v1292_v14  ;;  %1611 = vmatprep.mubr.f32.mxu1 %v2467_v4 }
 0x30f   : > { %v2254_v21 = vpack.c.bf16 %v1301_v19, %v1293_v17  ;;  %2250 = vmatprep.subr.msk.bf16.mxu0 %vm2679_vm3, %v2248_v18 }
 0x310   : > { %2253 = vmatpush1.bf16.msk.msra.mxu0 %vm2679_vm3, %v2251_v15 }
 0x311   : > { %2256 = vmatprep.subr.msk.bf16.mxu1 %vm2679_vm3, %v2254_v21 }
 0x312   : > { %2259 = vmatpush1.bf16.msk.msra.mxu1 %vm2679_vm3, %v2257_v20 }
 0x313   : > { %2165 = vmatmul.mubr.msk.f32.vlgmr.msra.gmra.mrb[26].mxu0 %vm585_vm4, %v2675_v26 }
 0x314   : > { %1724 = vmatprep.mubr.f32.mxu0 %v2467_v4 }
 0x315   : > { %2168 = vmatmul.mubr.msk.f32.vlgmr.msra.gmra.mrb[26].mxu1 %vm585_vm4, %v2675_v26 }
 0x316   : > { %1795 = vmatprep.mubr.f32.mxu1 %v2467_v4 }
 0x3de   : > { %v1400_v30 = vpop.f32.mrb[24].mxu0 }
 0x3df   : > { %v1401_v31 = vadd.f32 %v1400_v30, %v1306_v29  ;;  %v1402_v22 = vpop.f32.mrb[25].mxu0 }
 0x3e0   : > { %v1403_v50 = vadd.f32 %v1402_v22, %v1306_v29  ;;  %v1471_v32 = vpop.f32.mrb[24].mxu1 }
 0x3e1   : > { %v1472_v33 = vadd.f32 %v1471_v32, %v1306_v29  ;;  %v1473_v34 = vpop.f32.mrb[25].mxu1  ;;  %v1618_v36 = vmax.f32 %v1401_v31, 0.0 }
 0x3e2   : > { %v1619_v28 = vmax.f32 %v1403_v50, 0.0  ;;  %v1474_v35 = vadd.f32 %v1473_v34, %v1306_v29 }
 0x3e3   : > { %v1620_v37 = vmax.f32 %v1472_v33, 0.0 }
 0x3e4   : > { %v1621_v26 = vmax.f32 %v1474_v35, 0.0  ;;  %2169 = vmatprep.subr.msk.mxu0 %vm1635_vm5, %v1619_v28 }
 0x3e5   : > { %2170 = vmatpush1.msk.msra.mxu0 %vm1635_vm5, %v1618_v36 }
 0x3e6   : > { %v1542_v38 = vpop.f32.mrb[26].mxu0  ;;  %2172 = vmatprep.subr.msk.mxu1 %vm1635_vm5, %v1621_v26  ;;  %2171 = vmatmul.mubr.msk.f32.vlgmr.msra.gmra.mrb[28].mxu0 %vm1632_vm6, %v1626_v23 }
 0x3e7   : > { %v1543_v39 = vadd.f32 %v1542_v38, %v1306_v29  ;;  %v1544_v40 = vpop.f32.mrb[27].mxu0  ;;  %2173 = vmatpush1.msk.msra.mxu1 %vm1635_vm5, %v1620_v37  ;;  %1866 = vmatprep.mubr.f32.mxu0 %v2467_v4 }
 0x3e8   : > { %v1545_v24 = vadd.f32 %v1544_v40, %v1306_v29  ;;  %v1613_v41 = vpop.f32.mrb[26].mxu1  ;;  %2174 = vmatmul.mubr.msk.f32.vlgmr.msra.gmra.mrb[28].mxu1 %vm1632_vm6, %v1626_v23 }
 0x3e9   : > { %v1614_v42 = vadd.f32 %v1613_v41, %v1306_v29  ;;  %v1615_v25 = vpop.f32.mrb[27].mxu1  ;;  %1937 = vmatprep.mubr.f32.mxu1 %v2467_v4  ;;  %v1622_v45 = vmax.f32 %v1543_v39, 0.0  ;;  %v1958_v4 = vunpack.c.0.s8 %v1957_v49 }
 0x3ea   : > { %v1623_v43 = vmax.f32 %v1545_v24, 0.0  ;;  %v1616_v44 = vadd.f32 %v1615_v25, %v1306_v29 }
 0x3eb   : > { %v1624_v47 = vmax.f32 %v1614_v42, 0.0  ;;  %v1961_v55 = vsub.s32 %v1958_v4, %v2637_v3 }
 0x3ec   : > { %v1625_v46 = vmax.f32 %v1616_v44, 0.0  ;;  %2175 = vmatprep.subr.msk.mxu0 %vm1635_vm5, %v1623_v43 }
 0x3ed   : > { %2176 = vmatpush1.msk.msra.mxu0 %vm1635_vm5, %v1622_v45 }
 0x3ee   : > { %2178 = vmatprep.subr.msk.mxu1 %vm1635_vm5, %v1625_v46  ;;  %2177 = vmatmul.mubr.msk.f32.vlgmr.msra.gmra.mrb[30].mxu0 %vm1632_vm6, %v1626_v23 }
 0x3ef   : > { %2179 = vmatpush1.msk.msra.mxu1 %vm1635_vm5, %v1624_v47 }
 0x3f0   : > { %2180 = vmatmul.mubr.msk.f32.vlgmr.msra.gmra.mrb[30].mxu1 %vm1632_vm6, %v1626_v23 }
 0x4b9   : > { %v1726_v52 = vpop.f32.mrb[28].mxu0 }
 0x4ba   : > { %v1728_v53 = vpop.f32.mrb[29].mxu0  ;;  %v1727_v54 = vadd.f32 %v1726_v52, %v1630_v51 }
 0x4bb   : > { %v1797_v56 = vpop.f32.mrb[28].mxu1  ;;  %v1729_v57 = vadd.f32 %v1728_v53, %v1630_v51 }
 0x4bc   : > { %v1799_v58 = vpop.f32.mrb[29].mxu1  ;;  %v1798_v59 = vadd.f32 %v1797_v56, %v1630_v51 }
 0x4bd   : > { %v1800_v60 = vadd.f32 %v1799_v58, %v1630_v51  ;;  %v1952_v61 = vcombine.low %v1727_v54, %v1729_v57 }
 0x4bf   : > { %v1953_v62 = vcombine.low %v1798_v59, %v1800_v60  ;;  %v1962_v63 = vrot.slane %v1952_v61, %v1961_v55 }
 0x4c1   : > { %v1868_v0 = vpop.f32.mrb[30].mxu0  ;;  %v1969_v1 = vrot.slane %v1953_v62, %v1961_v55 }
 0x4c2   : > { %v1869_v2 = vadd.f32 %v1868_v0, %v1630_v51  ;;  %v1870_v5 = vpop.f32.mrb[31].mxu0 }
 0x4c3   : > { %v1939_v6 = vpop.f32.mrb[30].mxu1  ;;  %v1871_v7 = vadd.f32 %v1870_v5, %v1630_v51  ;;  %v1984_v8 = vcombine.low %v1962_v63, %v1969_v1 }
 0x4c4   : > { %v1940_v9 = vadd.f32 %v1939_v6, %v1630_v51  ;;  %v1941_v10 = vpop.f32.mrb[31].mxu1 }
 0x4c5   : > { %v1954_v3 = vcombine.low %v1869_v2, %v1871_v7  ;;  %v1942_v11 = vadd.f32 %v1941_v10, %v1630_v51  ;;  %v1992_v12 = vrot.slane %v1984_v8, %v1961_v55 }
 0x4c7   : > { %v1976_v13 = vrot.slane %v1954_v3, %v1961_v55  ;;  %v1955_v14 = vcombine.low %v1940_v9, %v1942_v11 }
 0x4c9   : > { %v1983_v15 = vrot.slane %v1955_v14, %v1961_v55 }
 0x4cb   : > { %v1985_v16 = vcombine.low %v1976_v13, %v1983_v15 }
 0x4cd   : > { %v1999_v17 = vrot.slane %v1985_v16, %v1961_v55 }
 0x4cf   : > { %v2000_v18 = vcombine.low %v1992_v12, %v1999_v17 }
 0x4d1   : > { %2002 = vst [vmem:[%s174_s27] sm:$0xff] %v2000_v18 }
 0x4d2   : > { %2403 = shalt.err (!%p2400_p7)
}
 0x4d3   : > { %s2404_s7 = scalar_lea.hbm %s2814_s30, 128  ;;  %s2408_s25 = scalar_lea.hbm %s2860_s2, 256 }
 0x4d4   : > { %p2405_p9 = scmp.ne.s32.totalorder %s2814_s30, %s2404_s7  ;;  %p2409_p0 = scmp.lt.u32.totalorder %s2814_s30, %s2860_s2 }
 0x4d5   : > { %p2410_p1 = scmp.lt.u32.totalorder %s2408_s25, %s2404_s7  ;;  %p2412_p4 = scmp.lt.u32.totalorder %s2404_s7, %s2814_s30 }
 0x4d6   : > { %p2406_p2 = pnand %p2405_p9, %p2580_p12 }
 0x4d7   : > { %p2411_p11 = por %p2410_p1, %p2409_p0 }
 0x4d8   : > { %p2407_p5 = pneg %p2406_p2 }
 0x4d9   : > { %p2413_p6 = por %p2412_p4, %p2411_p11 }
 0x4db   : > { %p2414_p8 = pnand %p2413_p6, %p2407_p5 }
 0x4dd   : > { %2417 = shalt.err (!%p2414_p8)
}
 0x4de   : > { %2266 = dma.vmem_to_hbm [thread:$0]  (%p2580_p12), %s2816_s22, 128, %s2814_s30, %s2004_s3  }
 0x4df PF: > { %s2030_s19 = sand.u32 1, %s2448_s9   ;;  %p2877_p10 = scmp.ne.s32.totalorder %s2865_s16, 0 }
 0x4e0   : > { %p2878_p13 = scmp.ge.s32.totalorder %s2460_s12, 2  ;;  %s2031_s29 = scalar_lea.sflag [#allocation4], %s2030_s19 }
 0x4e2   : > { %p2277_p3 = pnand %p2878_p13, %p2877_p10 }
 0x4e4   : > { %2443 = dma.done.wait (!%p2277_p3), %s2031_s29, 128  }
 0x4e5   : > { %2445 = vsyncadd (!%p2277_p3), %s2031_s29, 4294967168  ;;  %p16_p7 = scmp.ge.s32.totalorder %s2545_s21, 4   ;;  %s2879_s9 = smov %s2452_s10 }
 0x4e6   : > { %s2880_s10 = smov %s2456_s11  ;;  %s2881_s11 = smov %s2576_s8 }
 0x4e7   : > { %s2882_s12 = smov %s2545_s21  ;;  %18 = sbr.rel (!%p16_p7) target bundleno = 6 (0x6), region = 77 }
 0x4ee   :  { %2036 = vsyncpa [#allocation3], 1 }
 0x4ef   :  { %2038 = vsyncpa [#allocation3 + $0x1], 1 }
 0x4f0   :  { %2039 = vsyncpa [#allocation6], 1 }
 0x4f1   :  { %2040 = vsyncpa [#allocation4], 1 }
 0x4f2   :  { %2042 = vsyncpa [#allocation4 + $0x1], 1 }

</bundles_post_ra>
